<compile_context>
chip_gen: v7x
topology: tpu7x:2x2x1
jax: 0.10.0
libtpu: 0.0.40
codegen_flags: <defaults>
</compile_context>

<pallas_src>
import functools

import jax
import jax.numpy as jnp
import numpy as np
from jax.experimental import pallas as pl
from jax.experimental.pallas import tpu as pltpu


# Geometry fixed by the PyTorch module -----------------------------------------
CHANNELS = 40        # forced by EEGDecoder's .view(-1, 16, 40)
SEQ_IN = 16          # spatial extent after the permute
UPSAMPLE_W = 104     # nn.Upsample((1, 104))
BN_EPS = 1e-5
LANE = 128           # TPU lane width


# ------------------------------------------------------------------------------
# Pallas kernel
# ------------------------------------------------------------------------------
def eeg_decoder_kernel(x_ref, we_ref, be_ref, wf_ref, bias_ref, s_ref, tb_ref,
                       o_ref, tstack_ref, *, bpb, w_in, w_tot, k_t, gl):
    """One batch-block of the EEGDecoder forward, fully VMEM-resident."""
    f32 = jnp.float32

    # 1) enhance_conv (1x1) + ELU on the small pre-upsample rows (bpb*16, 40).
    y = jnp.dot(x_ref[...], we_ref[...], preferred_element_type=f32) + be_ref[...]
    act = jnp.where(y > 0.0, y, jnp.exp(jnp.minimum(y, 0.0)) - 1.0)

    # 2) BN + spatial + temporal channel mixing fused into ONE matmul.  Columns
    #    are kt-major blocks, each padded to a full gl(=128)-lane tile, so the
    #    per-kt slices below are tile-aligned vreg selections (no relayout).
    #    bias_ref carries the spatial bias and the BN shift pushed through the
    #    temporal weights; it only applies where an input column exists, which
    #    the shift matrix S enforces automatically.
    t = jnp.dot(act, wf_ref[...], preferred_element_type=f32) + bias_ref[...]

    # 3) Restack the per-kt lane blocks as kt-major rows in a VMEM scratch.
    #    All slice starts are multiples of (8, 128) -> aligned, unmasked stores.
    for kt in range(k_t):
        tstack_ref[:, kt * w_in:(kt + 1) * w_in, :] = (
            t[:, kt * gl:(kt + 1) * gl].reshape(bpb, w_in, gl))

    # 4) shift(+kt) o nearest-upsample(16->104) o sum-over-kt is one constant
    #    0/1 matrix S (w_tot, k_t*w_in): one matmul per batch row, and the
    #    lane-dense output block is written exactly once.
    s_mat = s_ref[...]
    tb = tb_ref[...]
    for b in range(bpb):
        o_ref[b] = jnp.dot(s_mat, tstack_ref[b],
                           preferred_element_type=f32) + tb


# ------------------------------------------------------------------------------
# Wrapper: parameter folding/fusion + pallas_call + output layout plumbing
# ------------------------------------------------------------------------------
def _prepare_operands(encoded, params):
    """Fold / fuse the PyTorch parameters into a small set of matmul operands."""
    b, w_in, c = encoded.shape
    k_sp = params["sp_w"].shape[2]
    k_t = params["t_w"].shape[3]
    c_out = params["t_w"].shape[1]
    w_out = UPSAMPLE_W
    w_tot = w_out + k_t - 1
    g = k_sp * c_out
    gl = ((g + LANE - 1) // LANE) * LANE          # lane-dense padded column count
    hp = "highest"

    # x[b, ci, 0, w] == encoded[b, w, ci]  ->  channels-last rows (b, w).
    x2d = encoded.reshape(b * w_in, c).astype(jnp.float32)

    # enhance_conv (Conv2d 1x1): weight (Co, Ci, 1, 1), stored pre-transposed.
    we_t = jnp.transpose(params["enh_w"][:, :, 0, 0]).astype(jnp.float32)
    be = params["enh_b"][None, :].astype(jnp.float32)

    # BatchNorm2d (eval) as a per-channel affine, folded into the fused weight.
    bn_scale = params["bn_gamma"] / jnp.sqrt(params["bn_var"] + BN_EPS)
    bn_shift = params["bn_beta"] - params["bn_mean"] * bn_scale

    # spatial ConvTranspose2d (Ci, M, Ksp, 1) and temporal (M, Co, 1, Kt) are
    # back-to-back linear maps per (b, w): pre-contract the middle channels.
    wsp = params["sp_w"][:, :, :, 0]                           # (Ci, M, Ksp)
    wt = params["t_w"][:, :, 0, :]                             # (M, Co, Kt)
    wf = jnp.einsum("cmh,mot->ctho", wsp, wt, precision=hp)    # (Ci, Kt, Ksp, Co)
    bias_kt = (jnp.einsum("m,mot->to", params["sp_b"], wt, precision=hp)[:, None, :]
               + jnp.einsum("c,ctho->tho", bn_shift, wf, precision=hp))
    wf_bn = bn_scale[:, None, None, None] * wf                 # BN scale folded in

    # Pad each kt block of columns to a full 128-lane tile (kt-major layout).
    wf_all = jnp.zeros((c, k_t, gl), jnp.float32).at[:, :, :g].set(
        wf_bn.reshape(c, k_t, g)).reshape(c, k_t * gl)
    bias_all = jnp.zeros((k_t, gl), jnp.float32).at[:, :g].set(
        bias_kt.reshape(k_t, g)).reshape(1, k_t * gl)
    tb_pad = jnp.zeros((1, gl), jnp.float32).at[0, :g].set(
        jnp.broadcast_to(params["t_b"][None, :], (k_sp, c_out)).reshape(g))

    # shift + nearest upsample (PyTorch floor rule) + sum over kt as ONE matrix.
    idx = (np.arange(w_out) * w_in) // w_out
    s_np = np.zeros((w_tot, k_t * w_in), np.float32)
    for kt in range(k_t):
        s_np[kt + np.arange(w_out), kt * w_in + idx] = 1.0
    s_mat = jnp.asarray(s_np)

    meta = dict(batch=b, w_in=w_in, w_out=w_out, w_tot=w_tot, k_t=k_t,
                k_sp=k_sp, c_out=c_out, g=g, gl=gl, c=c)
    return (x2d, we_t, be, wf_all, bias_all, s_mat, tb_pad), meta


def eeg_decoder_forward(encoded, params):
    """EEGDecoder.forward (eval mode) via one Pallas kernel."""
    if encoded.ndim != 3:                    # EEGDecoder's .view(-1, 16, 40)
        encoded = encoded.reshape(-1, SEQ_IN, CHANNELS)
    operands, m = _prepare_operands(encoded, params)
    b, w_in, w_tot = m["batch"], m["w_in"], m["w_tot"]
    k_t, k_sp, c_out = m["k_t"], m["k_sp"], m["c_out"]
    g, gl, c = m["g"], m["gl"], m["c"]

    # Batch blocks per grid step: bounds per-step VMEM for large B and lets
    # multi-TensorCore chips shard the batch; toy B collapses to one step.
    bpb = 1
    for cand in (8, 4, 2, 1):
        if b % cand == 0:
            bpb = cand
            break
    grid = (b // bpb,)

    kernel = functools.partial(eeg_decoder_kernel, bpb=bpb, w_in=w_in,
                               w_tot=w_tot, k_t=k_t, gl=gl)
    out_pad = pl.pallas_call(
        kernel,
        out_shape=jax.ShapeDtypeStruct((b, w_tot, gl), jnp.float32),
        grid=grid,
        in_specs=[
            pl.BlockSpec((bpb * w_in, c), lambda i: (i, 0)),      # x rows
            pl.BlockSpec((c, c), lambda i: (0, 0)),               # enhance W
            pl.BlockSpec((1, c), lambda i: (0, 0)),               # enhance b
            pl.BlockSpec((c, k_t * gl), lambda i: (0, 0)),        # fused W (BN folded)
            pl.BlockSpec((1, k_t * gl), lambda i: (0, 0)),        # fused per-kt bias
            pl.BlockSpec((w_tot, k_t * w_in), lambda i: (0, 0)),  # shift+upsample S
            pl.BlockSpec((1, gl), lambda i: (0, 0)),              # temporal bias
        ],
        out_specs=pl.BlockSpec((bpb, w_tot, gl), lambda i: (i, 0, 0)),
        scratch_shapes=[pltpu.VMEM((bpb, k_t * w_in, gl), jnp.float32)],
        compiler_params=pltpu.CompilerParams(
            dimension_semantics=("parallel",)),
    )(*operands)

    # (B, Wt, gl) -> drop lane padding -> (B, Cout, Ksp, Wt): layout plumbing only.
    return out_pad[:, :, :g].reshape(b, w_tot, k_sp, c_out).transpose(0, 3, 2, 1)


# ------------------------------------------------------------------------------
# Pure-JAX reference (direct transcription of the PyTorch module, eval mode)
# ------------------------------------------------------------------------------
def reference_decoder(encoded, params):
    if encoded.ndim != 3:
        encoded = encoded.reshape(-1, SEQ_IN, CHANNELS)
    hp = "highest"
    b, w_in, c = encoded.shape
    k_sp = params["sp_w"].shape[2]
    k_t = params["t_w"].shape[3]
    c_out = params["t_w"].shape[1]
    w_out = UPSAMPLE_W

    x = jnp.transpose(encoded[:, None, :, :], (0, 3, 1, 2))      # (B, C, 1, 16)
    # enhance_conv (1x1)
    y = jnp.einsum("oc,bchw->bohw", params["enh_w"][:, :, 0, 0], x,
                   precision=hp) + params["enh_b"][None, :, None, None]
    # Upsample((1, 104), mode='nearest')
    idx = (jnp.arange(w_out) * w_in) // w_out
    y = y[:, :, :, idx]
    # ELU
    y = jnp.where(y > 0.0, y, jnp.exp(jnp.minimum(y, 0.0)) - 1.0)
    # BatchNorm2d (eval: running stats)
    y = ((y - params["bn_mean"][None, :, None, None])
         / jnp.sqrt(params["bn_var"][None, :, None, None] + BN_EPS)
         * params["bn_gamma"][None, :, None, None]
         + params["bn_beta"][None, :, None, None])
    # spatial ConvTranspose2d (Ksp, 1)
    y0 = y[:, :, 0, :]                                           # (B, C, 104)
    s = jnp.einsum("bcw,cok->bokw", y0, params["sp_w"][:, :, :, 0],
                   precision=hp) + params["sp_b"][None, :, None, None]
    # temporal ConvTranspose2d (1, Kt)
    out = jnp.zeros((b, c_out, k_sp, w_out + k_t - 1), jnp.float32)
    out = out + params["t_b"][None, :, None, None]
    for kt in range(k_t):
        contrib = jnp.einsum("bikw,io->bokw", s, params["t_w"][:, :, 0, kt],
                             precision=hp)
        out = out.at[:, :, :, kt:kt + w_out].add(contrib)
    return out


# ------------------------------------------------------------------------------
if __name__ == "__main__":
    # Config: channel_size=40 (forced by the (-1, 16, 40) view), in_channels=8
    # decoded EEG channels, spatial_conv_size=4, temporal_conv_size=5, dropout unused.
    B, K_SP, K_T, C_OUT = 2, 4, 5, 8
    C, W_IN = CHANNELS, SEQ_IN

    key = jax.random.PRNGKey(0)
    ks = jax.random.split(key, 11)
    s = 0.1
    params = {
        "enh_w": s * jax.random.normal(ks[0], (C, C, 1, 1), jnp.float32),
        "enh_b": s * jax.random.normal(ks[1], (C,), jnp.float32),
        "sp_w":  s * jax.random.normal(ks[2], (C, C, K_SP, 1), jnp.float32),
        "sp_b":  s * jax.random.normal(ks[3], (C,), jnp.float32),
        "t_w":   s * jax.random.normal(ks[4], (C, C_OUT, 1, K_T), jnp.float32),
        "t_b":   s * jax.random.normal(ks[5], (C_OUT,), jnp.float32),
        "bn_gamma": 1.0 + 0.1 * jax.random.normal(ks[6], (C,), jnp.float32),
        "bn_beta":  0.1 * jax.random.normal(ks[7], (C,), jnp.float32),
        "bn_mean":  0.1 * jax.random.normal(ks[8], (C,), jnp.float32),
        "bn_var":   1.0 + jax.random.uniform(ks[9], (C,), jnp.float32),
    }
    encoded = jax.random.normal(ks[10], (B, W_IN, C), jnp.float32)

    out = eeg_decoder_forward(encoded, params)
    out = jax.block_until_ready(out)

    ref = reference_decoder(encoded, params)
    assert out.shape == (B, C_OUT, K_SP, UPSAMPLE_W + K_T - 1), out.shape
    # Tolerance leaves headroom for MXU pass-precision vs. the highest-precision
    # host reference; structural errors are orders of magnitude larger.
    max_err = float(jnp.max(jnp.abs(out - ref)))
    assert jnp.allclose(out, ref, rtol=1e-2, atol=1e-2), max_err
    print("KERNEL_OK")
</pallas_src>

<mosaic_0001>
module attributes {stable_mosaic.version = 11 : i64} {
  func.func @eeg_decoder_kernel(%arg0: i32, %arg1: memref<32x40xf32, #tpu.memory_space<vmem>>, %arg2: memref<40x40xf32, #tpu.memory_space<vmem>>, %arg3: memref<1x40xf32, #tpu.memory_space<vmem>>, %arg4: memref<40x640xf32, #tpu.memory_space<vmem>>, %arg5: memref<1x640xf32, #tpu.memory_space<vmem>>, %arg6: memref<108x80xf32, #tpu.memory_space<vmem>>, %arg7: memref<1x128xf32, #tpu.memory_space<vmem>>, %arg8: memref<2x108x128xf32, #tpu.memory_space<vmem>>, %arg9: memref<2x80x128xf32, #tpu.memory_space<vmem>>) attributes {dimension_semantics = [#tpu.dimension_semantics<parallel>], iteration_bounds = array<i64: 1>, scalar_prefetch = 0 : i64, scratch_operands = 1 : i64, tpu.core_type = #tpu.core_type<tc>, window_params = [{transform_indices = @transform_0, window_bounds = array<i64: 32, 40>}, {pipeline_mode = #tpu.pipeline_mode<synchronous>, transform_indices = @transform_1, window_bounds = array<i64: 40, 40>}, {pipeline_mode = #tpu.pipeline_mode<synchronous>, transform_indices = @transform_2, window_bounds = array<i64: 1, 40>}, {pipeline_mode = #tpu.pipeline_mode<synchronous>, transform_indices = @transform_3, window_bounds = array<i64: 40, 640>}, {pipeline_mode = #tpu.pipeline_mode<synchronous>, transform_indices = @transform_4, window_bounds = array<i64: 1, 640>}, {pipeline_mode = #tpu.pipeline_mode<synchronous>, transform_indices = @transform_5, window_bounds = array<i64: 108, 80>}, {pipeline_mode = #tpu.pipeline_mode<synchronous>, transform_indices = @transform_6, window_bounds = array<i64: 1, 128>}, {transform_indices = @transform_7, window_bounds = array<i64: 2, 108, 128>}]} {
    %c0 = arith.constant 0 : index
    %c0_0 = arith.constant 0 : index
    %0 = vector.load %arg1[%c0, %c0_0] : memref<32x40xf32, #tpu.memory_space<vmem>>, vector<32x40xf32>
    %c0_1 = arith.constant 0 : index
    %c0_2 = arith.constant 0 : index
    %1 = vector.load %arg2[%c0_1, %c0_2] : memref<40x40xf32, #tpu.memory_space<vmem>>, vector<40x40xf32>
    %cst = arith.constant dense<0.000000e+00> : vector<32x40xf32>
    %2 = tpu.matmul %0, %1, %cst {dimension_numbers = #tpu.dot_dimension_numbers<[1], [0], [0], [1], [0, 0, 1, 1], [], []>} : vector<32x40xf32>, vector<40x40xf32>, vector<32x40xf32> -> vector<32x40xf32>
    %c0_3 = arith.constant 0 : index
    %c0_4 = arith.constant 0 : index
    %3 = vector.load %arg3[%c0_3, %c0_4] : memref<1x40xf32, #tpu.memory_space<vmem>>, vector<1x40xf32>
    %4 = vector.broadcast %3 : vector<1x40xf32> to vector<32x40xf32>
    %5 = arith.addf %2, %4 : vector<32x40xf32>
    %cst_5 = arith.constant 0.000000e+00 : f32
    %6 = vector.broadcast %cst_5 : f32 to vector<32x40xf32>
    %7 = arith.cmpf ogt, %5, %6 : vector<32x40xf32>
    %cst_6 = arith.constant 0.000000e+00 : f32
    %8 = vector.broadcast %cst_6 : f32 to vector<32x40xf32>
    %9 = arith.minimumf %5, %8 : vector<32x40xf32>
    %10 = math.exp %9 : vector<32x40xf32>
    %cst_7 = arith.constant 1.000000e+00 : f32
    %11 = vector.broadcast %cst_7 : f32 to vector<32x40xf32>
    %12 = arith.subf %10, %11 : vector<32x40xf32>
    %13 = arith.select %7, %5, %12 : vector<32x40xi1>, vector<32x40xf32>
    %c0_8 = arith.constant 0 : index
    %c0_9 = arith.constant 0 : index
    %14 = vector.load %arg4[%c0_8, %c0_9] : memref<40x640xf32, #tpu.memory_space<vmem>>, vector<40x640xf32>
    %cst_10 = arith.constant dense<0.000000e+00> : vector<32x640xf32>
    %15 = tpu.matmul %13, %14, %cst_10 {dimension_numbers = #tpu.dot_dimension_numbers<[1], [0], [0], [1], [0, 0, 1, 1], [], []>} : vector<32x40xf32>, vector<40x640xf32>, vector<32x640xf32> -> vector<32x640xf32>
    %c0_11 = arith.constant 0 : index
    %c0_12 = arith.constant 0 : index
    %16 = vector.load %arg5[%c0_11, %c0_12] : memref<1x640xf32, #tpu.memory_space<vmem>>, vector<1x640xf32>
    %17 = vector.broadcast %16 : vector<1x640xf32> to vector<32x640xf32>
    %18 = arith.addf %15, %17 : vector<32x640xf32>
    %19 = vector.extract_strided_slice %18 {offsets = [0, 0], sizes = [32, 128], strides = [1, 1]} : vector<32x640xf32> to vector<32x128xf32>
    %20 = vector.shape_cast %19 : vector<32x128xf32> to vector<2x16x128xf32>
    %c0_13 = arith.constant 0 : index
    %c0_14 = arith.constant 0 : index
    %c0_15 = arith.constant 0 : index
    %21 = vector.load %arg9[%c0_13, %c0_14, %c0_15] : memref<2x80x128xf32, #tpu.memory_space<vmem>>, vector<2x16x128xf32>
    tpu.vector_store %arg9[%c0_13, %c0_14, %c0_15], %20 {strides = array<i32>} : memref<2x80x128xf32, #tpu.memory_space<vmem>>, vector<2x16x128xf32>,
    %22 = vector.extract_strided_slice %18 {offsets = [0, 128], sizes = [32, 128], strides = [1, 1]} : vector<32x640xf32> to vector<32x128xf32>
    %23 = vector.shape_cast %22 : vector<32x128xf32> to vector<2x16x128xf32>
    %c0_16 = arith.constant 0 : index
    %c16 = arith.constant 16 : index
    %c0_17 = arith.constant 0 : index
    %24 = vector.load %arg9[%c0_16, %c16, %c0_17] : memref<2x80x128xf32, #tpu.memory_space<vmem>>, vector<2x16x128xf32>
    tpu.vector_store %arg9[%c0_16, %c16, %c0_17], %23 {strides = array<i32>} : memref<2x80x128xf32, #tpu.memory_space<vmem>>, vector<2x16x128xf32>,
    %25 = vector.extract_strided_slice %18 {offsets = [0, 256], sizes = [32, 128], strides = [1, 1]} : vector<32x640xf32> to vector<32x128xf32>
    %26 = vector.shape_cast %25 : vector<32x128xf32> to vector<2x16x128xf32>
    %c0_18 = arith.constant 0 : index
    %c32 = arith.constant 32 : index
    %c0_19 = arith.constant 0 : index
    %27 = vector.load %arg9[%c0_18, %c32, %c0_19] : memref<2x80x128xf32, #tpu.memory_space<vmem>>, vector<2x16x128xf32>
    tpu.vector_store %arg9[%c0_18, %c32, %c0_19], %26 {strides = array<i32>} : memref<2x80x128xf32, #tpu.memory_space<vmem>>, vector<2x16x128xf32>,
    %28 = vector.extract_strided_slice %18 {offsets = [0, 384], sizes = [32, 128], strides = [1, 1]} : vector<32x640xf32> to vector<32x128xf32>
    %29 = vector.shape_cast %28 : vector<32x128xf32> to vector<2x16x128xf32>
    %c0_20 = arith.constant 0 : index
    %c48 = arith.constant 48 : index
    %c0_21 = arith.constant 0 : index
    %30 = vector.load %arg9[%c0_20, %c48, %c0_21] : memref<2x80x128xf32, #tpu.memory_space<vmem>>, vector<2x16x128xf32>
    tpu.vector_store %arg9[%c0_20, %c48, %c0_21], %29 {strides = array<i32>} : memref<2x80x128xf32, #tpu.memory_space<vmem>>, vector<2x16x128xf32>,
    %31 = vector.extract_strided_slice %18 {offsets = [0, 512], sizes = [32, 128], strides = [1, 1]} : vector<32x640xf32> to vector<32x128xf32>
    %32 = vector.shape_cast %31 : vector<32x128xf32> to vector<2x16x128xf32>
    %c0_22 = arith.constant 0 : index
    %c64 = arith.constant 64 : index
    %c0_23 = arith.constant 0 : index
    %33 = vector.load %arg9[%c0_22, %c64, %c0_23] : memref<2x80x128xf32, #tpu.memory_space<vmem>>, vector<2x16x128xf32>
    tpu.vector_store %arg9[%c0_22, %c64, %c0_23], %32 {strides = array<i32>} : memref<2x80x128xf32, #tpu.memory_space<vmem>>, vector<2x16x128xf32>,
    %c0_24 = arith.constant 0 : index
    %c0_25 = arith.constant 0 : index
    %34 = vector.load %arg6[%c0_24, %c0_25] : memref<108x80xf32, #tpu.memory_space<vmem>>, vector<108x80xf32>
    %c0_26 = arith.constant 0 : index
    %c0_27 = arith.constant 0 : index
    %35 = vector.load %arg7[%c0_26, %c0_27] : memref<1x128xf32, #tpu.memory_space<vmem>>, vector<1x128xf32>
    %c0_28 = arith.constant 0 : index
    %c0_29 = arith.constant 0 : index
    %c0_30 = arith.constant 0 : index
    %36 = vector.load %arg9[%c0_28, %c0_29, %c0_30] : memref<2x80x128xf32, #tpu.memory_space<vmem>>, vector<1x80x128xf32>
    %37 = vector.shape_cast %36 : vector<1x80x128xf32> to vector<80x128xf32>
    %cst_31 = arith.constant dense<0.000000e+00> : vector<108x128xf32>
    %38 = tpu.matmul %34, %37, %cst_31 {dimension_numbers = #tpu.dot_dimension_numbers<[1], [0], [0], [1], [0, 0, 1, 1], [], []>} : vector<108x80xf32>, vector<80x128xf32>, vector<108x128xf32> -> vector<108x128xf32>
    %39 = vector.broadcast %35 : vector<1x128xf32> to vector<108x128xf32>
    %40 = arith.addf %38, %39 : vector<108x128xf32>
    %c0_32 = arith.constant 0 : index
    %c0_33 = arith.constant 0 : index
    %c0_34 = arith.constant 0 : index
    %41 = vector.load %arg8[%c0_32, %c0_33, %c0_34] : memref<2x108x128xf32, #tpu.memory_space<vmem>>, vector<1x108x128xf32>
    %42 = vector.shape_cast %41 : vector<1x108x128xf32> to vector<108x128xf32>
    %43 = vector.shape_cast %40 : vector<108x128xf32> to vector<1x108x128xf32>
    tpu.vector_store %arg8[%c0_32, %c0_33, %c0_34], %43 {strides = array<i32>} : memref<2x108x128xf32, #tpu.memory_space<vmem>>, vector<1x108x128xf32>,
    %c1 = arith.constant 1 : index
    %c0_35 = arith.constant 0 : index
    %c0_36 = arith.constant 0 : index
    %44 = vector.load %arg9[%c1, %c0_35, %c0_36] : memref<2x80x128xf32, #tpu.memory_space<vmem>>, vector<1x80x128xf32>
    %45 = vector.shape_cast %44 : vector<1x80x128xf32> to vector<80x128xf32>
    %cst_37 = arith.constant dense<0.000000e+00> : vector<108x128xf32>
    %46 = tpu.matmul %34, %45, %cst_37 {dimension_numbers = #tpu.dot_dimension_numbers<[1], [0], [0], [1], [0, 0, 1, 1], [], []>} : vector<108x80xf32>, vector<80x128xf32>, vector<108x128xf32> -> vector<108x128xf32>
    %47 = vector.broadcast %35 : vector<1x128xf32> to vector<108x128xf32>
    %48 = arith.addf %46, %47 : vector<108x128xf32>
    %c1_38 = arith.constant 1 : index
    %c0_39 = arith.constant 0 : index
    %c0_40 = arith.constant 0 : index
    %49 = vector.load %arg8[%c1_38, %c0_39, %c0_40] : memref<2x108x128xf32, #tpu.memory_space<vmem>>, vector<1x108x128xf32>
    %50 = vector.shape_cast %49 : vector<1x108x128xf32> to vector<108x128xf32>
    %51 = vector.shape_cast %48 : vector<108x128xf32> to vector<1x108x128xf32>
    tpu.vector_store %arg8[%c1_38, %c0_39, %c0_40], %51 {strides = array<i32>} : memref<2x108x128xf32, #tpu.memory_space<vmem>>, vector<1x108x128xf32>,
    return
  }
  func.func @transform_0(%arg0: i32) -> (i32, i32) {
    %c0_i32 = arith.constant 0 : i32
    %c0_i32_0 = arith.constant 0 : i32
    return %arg0, %c0_i32 : i32, i32
  }
  func.func @transform_1(%arg0: i32) -> (i32, i32) {
    %c0_i32 = arith.constant 0 : i32
    %c0_i32_0 = arith.constant 0 : i32
    %c0_i32_1 = arith.constant 0 : i32
    return %c0_i32, %c0_i32_0 : i32, i32
  }
  func.func @transform_2(%arg0: i32) -> (i32, i32) {
    %c0_i32 = arith.constant 0 : i32
    %c0_i32_0 = arith.constant 0 : i32
    %c0_i32_1 = arith.constant 0 : i32
    return %c0_i32, %c0_i32_0 : i32, i32
  }
  func.func @transform_3(%arg0: i32) -> (i32, i32) {
    %c0_i32 = arith.constant 0 : i32
    %c0_i32_0 = arith.constant 0 : i32
    %c0_i32_1 = arith.constant 0 : i32
    return %c0_i32, %c0_i32_0 : i32, i32
  }
  func.func @transform_4(%arg0: i32) -> (i32, i32) {
    %c0_i32 = arith.constant 0 : i32
    %c0_i32_0 = arith.constant 0 : i32
    %c0_i32_1 = arith.constant 0 : i32
    return %c0_i32, %c0_i32_0 : i32, i32
  }
  func.func @transform_5(%arg0: i32) -> (i32, i32) {
    %c0_i32 = arith.constant 0 : i32
    %c0_i32_0 = arith.constant 0 : i32
    %c0_i32_1 = arith.constant 0 : i32
    return %c0_i32, %c0_i32_0 : i32, i32
  }
  func.func @transform_6(%arg0: i32) -> (i32, i32) {
    %c0_i32 = arith.constant 0 : i32
    %c0_i32_0 = arith.constant 0 : i32
    %c0_i32_1 = arith.constant 0 : i32
    return %c0_i32, %c0_i32_0 : i32, i32
  }
  func.func @transform_7(%arg0: i32) -> (i32, i32, i32) {
    %c0_i32 = arith.constant 0 : i32
    %c0_i32_0 = arith.constant 0 : i32
    %c0_i32_1 = arith.constant 0 : i32
    return %arg0, %c0_i32, %c0_i32_0 : i32, i32, i32
  }
}

</mosaic_0001>

<bundles_post_ra>
// kernel: tpu_custom_call.1
= control target key start
LH: loop header
LB: loop body
LE: loop exit
PB: predicated region body
PF: predicated region fallthrough
CT: control target
= control target key end

     0   :  { %12 = vsyncpa [#allocation4], 0  ;;  %s1667_s0 = inlined_call_operand.hbm [shape: f32[32,40], index: 0, kind: input, shape index: {}]   ;;  %s1668_s1 = inlined_call_operand.hbm [shape: f32[40,40], index: 1, kind: input, shape index: {}]   ;;  %s1669_s2 = inlined_call_operand.vmem [shape: f32[1,40], index: 2, kind: input, shape index: {}]   ;;  %s1670_s3 = inlined_call_operand.vmem [shape: f32[40,640], index: 3, kind: input, shape index: {}]   ;;  %s1671_s4 = inlined_call_operand.vmem [shape: f32[1,640], index: 4, kind: input, shape index: {}]   ;;  %s1672_s5 = inlined_call_operand.vmem [shape: f32[108,80], index: 5, kind: input, shape index: {}]   ;;  %s1673_s6 = inlined_call_operand.vmem [shape: f32[1,128], index: 6, kind: input, shape index: {}]   ;;  %s1674_s7 = inlined_call_operand.vmem [shape: f32[2,108,128], index: 7, kind: output, shape index: {}]  }
   0x1   :  { %13 = vsyncpa [#allocation6], 0  ;;  %s1306_s24 = smov [#allocation3]   ;;  %s1258_s28 = scalar_lea.hbm %s1667_s0, 512 }
   0x2   :  { %s19_s25 = sshll.u32 %s1306_s24, 4  ;;  %p1259_p0 = scmp.ne.s32.totalorder %s1667_s0, %s1258_s28  ;;  %s20_s25 = int_to_ptr.vmem [resolvable:$true] %s19_s25 }
   0x3   :  { %p1262_p1 = scmp.lt.u32.totalorder %s1258_s28, %s1667_s0 }
   0x5   :  { %p1264_p2 = pnand %p1262_p1, %p1259_p0 }
   0x7   :  { %1267 = shalt.err (!%p1264_p2)
}
   0x8   :  { %s1268_s10 = scalar_lea.vmem %s20_s25, 512  ;;  %p1273_p4 = scmp.lt.s32.totalorder %s20_s25, %s20_s25 }
   0x9   :  { %p1269_p3 = scmp.ne.s32.totalorder %s20_s25, %s1268_s10  ;;  %p1274_p5 = scmp.lt.s32.totalorder %s1268_s10, %s1268_s10 }
   0xb   :  { %p1275_p6 = por %p1274_p5, %p1273_p4 }
   0xd   :  { %p1276_p7 = pnand %p1275_p6, %p1269_p3 }
   0xf   :  { %1279 = shalt.err (!%p1276_p7)
}
  0x10   :  { %s1307_s11 = smov 128   ;;  %s1308_s12 = smov 8  }
  0x11   :  { %25 = dma.hbm_to_vmem [thread:$0]  %s1667_s0, 512, %s20_s25, [#allocation4], %s1307_s11, %s1307_s11, %s1308_s12  }
  0x12   :  { %s1309_s15 = smov [#allocation5]   ;;  %s1280_s19 = scalar_lea.hbm %s1668_s1, 640 }
  0x13   :  { %s31_s16 = sshll.u32 %s1309_s15, 4  ;;  %p1281_p8 = scmp.ne.s32.totalorder %s1668_s1, %s1280_s19  ;;  %s32_s16 = int_to_ptr.vmem [resolvable:$true] %s31_s16 }
  0x14   :  { %p1284_p9 = scmp.lt.u32.totalorder %s1280_s19, %s1668_s1 }
  0x16   :  { %p1286_p10 = pnand %p1284_p9, %p1281_p8 }
  0x18   :  { %1289 = shalt.err (!%p1286_p10)
}
  0x19   :  { %s1290_s24 = scalar_lea.vmem %s32_s16, 640  ;;  %p1295_p12 = scmp.lt.s32.totalorder %s32_s16, %s32_s16 }
  0x1a   :  { %p1291_p11 = scmp.ne.s32.totalorder %s32_s16, %s1290_s24  ;;  %p1296_p13 = scmp.lt.s32.totalorder %s1290_s24, %s1290_s24 }
  0x1c   :  { %p1297_p0 = por %p1296_p13, %p1295_p12 }
  0x1e   :  { %p1298_p1 = pnand %p1297_p0, %p1291_p11 }
  0x20   :  { %1301 = shalt.err (!%p1298_p1)
}
  0x21   :  { %37 = dma.hbm_to_vmem [thread:$0]  %s1668_s1, 640, %s32_s16, [#allocation6], %s1307_s11, %s1307_s11, %s1308_s12  }
  0x22   :  { %1302 = dma.done.wait [#allocation4], 512  }
  0x23   :  { %1303 = vsyncadd [#allocation4], 4294966784 }
  0x24   :  { %1304 = dma.done.wait [#allocation6], 640  }
  0x25   :  { %1305 = vsyncadd [#allocation6], 4294966656  ;;  %vm70_vm0 = vcmask 326656   ;;  %v58_v0 = vld [vmem:[#allocation5] sm:$0xff]  ;;  %v59_v1 = vld [vmem:[#allocation5 + $0x8] sm:$0xff]  ;;  %v1310_v34 = vmov 0.0  }
  0x26   :  { %v60_v2 = vld [vmem:[#allocation5 + $0x10] sm:$0xff]  ;;  %v1173_v3 = vpack.c.bf16 %v59_v1, %v58_v0  ;;  %v61_v4 = vld [vmem:[#allocation5 + $0x18] sm:$0xff]  ;;  %v54_v5 = vld [vmem:[#allocation3] sm:$0xff]  ;;  %320 = vmatprep.mubr.f32.mxu1 %v1310_v34  ;;  %vm570_vm5 = vcmask 654336  }
  0x27   :  { %v1177_v6 = vpack.c.bf16 %v61_v4, %v60_v2  ;;  %1069 = vmatprep.mubr.msk.f32.mxu0 %vm70_vm0, %v54_v5  ;;  %v62_v7 = vld [vmem:[#allocation5 + $0x20] sm:$0xff]  ;;  %v55_v8 = vld [vmem:[#allocation3 + $0x8] sm:$0xff]  ;;  %v56_v9 = vld [vmem:[#allocation3 + $0x10] sm:$0xff] }
  0x28   :  { %1174 = vmatprep.subr.bf16.mxu0 %v1173_v3  ;;  %v57_v10 = vld [vmem:[#allocation3 + $0x18] sm:$0xff]  ;;  %v193_v11 = vld [vmem:[%s1670_s3 + $0x8] sm:$0xff]  ;;  %v198_v12 = vld [vmem:[%s1670_s3 + $0x30] sm:$0xff] }
  0x29   :  { %1176 = vmatpush3.bf16.msra.mxu0 %v1173_v3  ;;  %v195_v13 = vld [vmem:[%s1670_s3 + $0x18] sm:$0xff]  ;;  %v1181_v14 = vpack.c.bf16 %v198_v12, %v193_v11  ;;  %v200_v15 = vld [vmem:[%s1670_s3 + $0x40] sm:$0xff]  ;;  %v197_v17 = vld [vmem:[%s1670_s3 + $0x28] sm:$0xff] }
  0x2a   :  { %1178 = vmatprep.subr.bf16.mxu0 %v1177_v6  ;;  %v192_v16 = vld [vmem:[%s1670_s3] sm:$0xff]  ;;  %v1189_v18 = vpack.c.bf16 %v200_v15, %v195_v13  ;;  %v194_v20 = vld [vmem:[%s1670_s3 + $0x10] sm:$0xff]  ;;  %v199_v21 = vld [vmem:[%s1670_s3 + $0x38] sm:$0xff]  ;;  %v219_v13 = vlaneseq }
  0x2b   :  { %v1183_v19 = vpack.c.bf16 %v197_v17, %v192_v16  ;;  %1182 = vmatprep.subr.bf16.mxu1 %v1181_v14  ;;  %v1191_v22 = vpack.c.bf16 %v199_v21, %v194_v20  ;;  %v203_v23 = vld [vmem:[%s1670_s3 + $0x58] sm:$0xff]  ;;  %v208_v24 = vld [vmem:[%s1670_s3 + $0x80] sm:$0xff]  ;;  %v205_v25 = vld [vmem:[%s1670_s3 + $0x68] sm:$0xff] }
  0x2c   :  { %v1185_v26 = vpack.c.bf16 %v208_v24, %v203_v23  ;;  %v210_v27 = vld [vmem:[%s1670_s3 + $0x90] sm:$0xff]  ;;  %v207_v29 = vld [vmem:[%s1670_s3 + $0x78] sm:$0xff]  ;;  %v204_v32 = vld [vmem:[%s1670_s3 + $0x60] sm:$0xff]  ;;  %v220_v14 = vshrl.u32 %v219_v13, 7 }
  0x2d   :  { %1180 = vmatpush3.bf16.msra.mxu0 %v1177_v6  ;;  %1184 = vmatpush1.bf16.msra.mxu1 %v1183_v19  ;;  %v202_v28 = vld [vmem:[%s1670_s3 + $0x50] sm:$0xff]  ;;  %v1193_v30 = vpack.c.bf16 %v210_v27, %v205_v25  ;;  %v209_v33 = vld [vmem:[%s1670_s3 + $0x88] sm:$0xff]  ;;  %v215_v37 = vld [vmem:[%s1670_s3 + $0xb8] sm:$0xff] }
  0x2e   :  { %1067 = vmatprep.subr.mxu0 %v62_v7  ;;  %v1187_v31 = vpack.c.bf16 %v207_v29, %v202_v28  ;;  %1186 = vmatprep.subr.bf16.mxu1 %v1185_v26  ;;  %v1195_v35 = vpack.c.bf16 %v209_v33, %v204_v32  ;;  %v213_v36 = vld [vmem:[%s1670_s3 + $0xa8] sm:$0xff]  ;;  %v212_v38 = vld [vmem:[%s1670_s3 + $0xa0] sm:$0xff]  ;;  %v214_v39 = vld [vmem:[%s1670_s3 + $0xb0] sm:$0xff]  ;;  %v221_v15 = vsub.s32 0, %v220_v14  ;;  %v229_v16 = vsub.s32 2, %v220_v14 }
  0x2f   :  { %v196_v40 = vld [vmem:[%s1670_s3 + $0x20] sm:$0xff]  ;;  %v201_v41 = vld [vmem:[%s1670_s3 + $0x48] sm:$0xff]  ;;  %v206_v62 = vld [vmem:[%s1670_s3 + $0x70] sm:$0xff]  ;;  %v233_v19 = vsub.s32 3, %v220_v14 }
  0x30   :  { %v1197_v42 = vpack.c.bf16 %v201_v41, %v196_v40  ;;  %v929_v43 = vld [vmem:[%s1669_s2] ss:$0 sm:$0xff]  ;;  %v211_v63 = vld [vmem:[%s1670_s3 + $0x98] sm:$0xff]  ;;  %v541_v13 = vld [vmem:[%s1672_s5 + $0x10] sm:$0xff] }
  0x31   :  { %1068 = vmatpush3.msra.mxu0 %v62_v7  ;;  %1188 = vmatpush1.bf16.msra.mxu1 %v1187_v31  ;;  %v1201_v3 = vpack.c.bf16 %v211_v63, %v206_v62  ;;  %v539_v12 = vld [vmem:[%s1672_s5] sm:$0xff] }
  0x32   :  { %1070 = vmatmul.mubr.msk.f32.vlgmr.msra.gmra.mrb[0].mxu0 %vm70_vm0, %v55_v8  ;;  %1190 = vmatprep.subr.bf16.mxu0 %v1189_v18  ;;  %v216_v8 = vld [vmem:[%s1670_s3 + $0xc0] sm:$0xff]  ;;  %v225_v18 = vsub.s32 1, %v220_v14 }
  0x33   :  { %1072 = vmatprep.mubr.msk.f32.mxu0 %vm70_vm0, %v56_v9  ;;  %1192 = vmatpush1.bf16.msra.mxu0 %v1191_v22  ;;  %v217_v17 = vld [vmem:[%s1671_s4] sm:$0x1f] }
  0x34   :  { %1194 = vmatprep.subr.bf16.mxu0 %v1193_v30  ;;  %264 = vmatprep.subr.mxu1 %v213_v36  ;;  %v222_v22 = vrot.slane %v217_v17, %v221_v15  ;;  %v230_v23 = vrot.slane %v217_v17, %v229_v16  ;;  %v226_v26 = vrot.slane %v217_v17, %v225_v18  ;;  %v543_v15 = vld [vmem:[%s1672_s5 + $0x20] sm:$0xff]  ;;  %v544_v16 = vld [vmem:[%s1672_s5 + $0x28] sm:$0xff]  ;;  %v546_v18 = vld [vmem:[%s1672_s5 + $0x38] sm:$0xff] }
  0x35   :  { %265 = vmatpush1.msra.mxu1 %v212_v38  ;;  %v234_v27 = vrot.slane %v217_v17, %v233_v19  ;;  %v547_v19 = vld [vmem:[%s1672_s5 + $0x40] sm:$0xff] }
  0x36   :  { %1073 = vmatmul.mubr.msk.f32.gmra.mrb[2].mxu0 %vm70_vm0, %v57_v10  ;;  %1198 = vmatprep.subr.bf16.mxu1 %v1197_v42 }
  0x37   :  { %409 = vmatprep.mubr.f32.mxu0 %v1310_v34  ;;  %1196 = vmatpush1.bf16.msra.mxu0 %v1195_v35 }
  0x38   :  { %353 = vmatprep.subr.mxu0 %v215_v37 }
  0x3b   :  { %354 = vmatpush1.msra.mxu0 %v214_v39 }
 0x105   :  { %v1071_v44 = vpop.f32.mrb[0].mxu0 }
 0x106   :  { %v155_v45 = vadd.f32 %v1071_v44, %v929_v43  ;;  %v149_v46 = vpop.f32.mrb[1].mxu0 }
 0x107   :  { %v150_v47 = vadd.f32 %v929_v43, %v149_v46  ;;  %v237_v46 = vsub.s32 4, %v220_v14  ;;  %v542_v14 = vld [vmem:[%s1672_s5 + $0x18] sm:$0xff] }
 0x108   :  { %v173_v48 = vmin.f32 %v155_v45, 0.0  ;;  %vm169_vm2 = vcmp.gt.f32.partialorder %v155_v45, 0.0 }
 0x109   :  { %v172_v49 = vmin.f32 %v150_v47, 0.0  ;;  %v1074_v50 = vpop.f32.mrb[2].mxu0  ;;  %vm168_vm1 = vcmp.gt.f32.partialorder %v150_v47, 0.0 }
 0x10a   :  { %v178_v51 = vmul.f32 1.442695, %v173_v48  ;;  %v165_v52 = vadd.f32 %v1074_v50, %v929_v43  ;;  %v159_v53 = vpop.f32.mrb[3].mxu0 }
 0x10b   :  { %v176_v54 = vmul.f32 1.442695, %v172_v49  ;;  %v160_v55 = vadd.f32 %v929_v43, %v159_v53 }
 0x10c   :  { %1250 = vpow2.f32 %v178_v51  ;;  %v175_v56 = vmin.f32 %v165_v52, 0.0  ;;  %vm171_vm4 = vcmp.gt.f32.partialorder %v165_v52, 0.0  ;;  %v238_v51 = vrot.slane %v217_v17, %v237_v46  ;;  %v545_v17 = vld [vmem:[%s1672_s5 + $0x30] sm:$0xff] }
 0x10d   :  { %1252 = vpow2.f32 %v176_v54  ;;  %v174_v57 = vmin.f32 %v160_v55, 0.0  ;;  %vm170_vm3 = vcmp.gt.f32.partialorder %v160_v55, 0.0 }
 0x10e   :  { %v182_v59 = vmul.f32 1.442695, %v175_v56 }
 0x10f   :  { %v180_v58 = vmul.f32 1.442695, %v174_v57 }
 0x111   :  { %1254 = vpow2.f32 %v180_v58 }
 0x112   :  { %1256 = vpow2.f32 %v182_v59 }
 0x116   :  { %v1251_v60 = vpop.eup %1250 }
 0x117   :  { %v1253_v61 = vpop.eup %1252  ;;  %v935_v2 = vadd.f32 -1.0, %v1251_v60 }
 0x118   :  { %v934_v0 = vadd.f32 -1.0, %v1253_v61 }
 0x119   :  { %v189_v5 = vsel %vm169_vm2, %v155_v45, %v935_v2 }
 0x11a   :  { %v188_v1 = vsel %vm168_vm1, %v150_v47, %v934_v0 }
 0x11b   :  { %v1255_v4 = vpop.eup %1254  ;;  %938 = vmatmul.mubr.msk.f32.vlgmr.msra.gmra.mrb[0].mxu1 %vm70_vm0, %v188_v1  ;;  %942 = vmatmul.mubr.msk.f32.vlgmr.msra.gmra.mrb[4].mxu0 %vm70_vm0, %v188_v1 }
 0x11c   :  { %326 = vmatprep.mubr.f32.mxu1 %v1310_v34  ;;  %415 = vmatprep.mubr.f32.mxu0 %v1310_v34  ;;  %v936_v6 = vadd.f32 -1.0, %v1255_v4  ;;  %v1257_v7 = vpop.eup %1256 }
 0x11d   :  { %1200 = vmatpush3.bf16.msra.mxu1 %v1197_v42  ;;  %v937_v10 = vadd.f32 -1.0, %v1257_v7 }
 0x11e   :  { %1202 = vmatprep.subr.bf16.mxu1 %v1201_v3  ;;  %v190_v9 = vsel %vm170_vm3, %v160_v55, %v936_v6 }
 0x11f   :  { %939 = vmatmul.mubr.msk.f32.gmra.mrb[2].mxu1 %vm70_vm0, %v189_v5  ;;  %943 = vmatmul.mubr.msk.f32.gmra.mrb[6].mxu0 %vm70_vm0, %v189_v5  ;;  %v191_v11 = vsel %vm171_vm4, %v165_v52, %v937_v10 }
 0x120   :  { %332 = vmatprep.mubr.f32.mxu1 %v1310_v34  ;;  %421 = vmatprep.mubr.f32.mxu0 %v1310_v34 }
 0x121   :  { %1204 = vmatpush3.bf16.msra.mxu1 %v1201_v3 }
 0x122   :  { %1083 = vmatprep.subr.mxu1 %v216_v8 }
 0x123   :  { %940 = vmatmul.mubr.msk.f32.gmra.mrb[4].mxu1 %vm70_vm0, %v190_v9  ;;  %944 = vmatmul.mubr.msk.f32.gmra.mrb[8].mxu0 %vm70_vm0, %v190_v9 }
 0x124   :  { %338 = vmatprep.mubr.f32.mxu1 %v1310_v34  ;;  %427 = vmatprep.mubr.f32.mxu0 %v1310_v34 }
 0x125   :  { %1084 = vmatpush3.msra.mxu1 %v216_v8 }
 0x127   :  { %941 = vmatmul.mubr.msk.f32.gmra.mrb[6].mxu1 %vm70_vm0, %v191_v11  ;;  %945 = vmatmul.mubr.msk.f32.gmra.mrb[10].mxu0 %vm70_vm0, %v191_v11 }
 0x128   :  { %1085 = vmatprep.mubr.msk.f32.mxu1 %vm70_vm0, %v188_v1  ;;  %1111 = vmatprep.mubr.msk.f32.mxu0 %vm570_vm5, %v539_v12 }
 0x12b   :  { %1086 = vmatmul.mubr.msk.f32.vlgmr.msra.gmra.mrb[8].mxu1 %vm70_vm0, %v189_v5 }
 0x12c   :  { %1088 = vmatprep.mubr.msk.f32.mxu1 %vm70_vm0, %v190_v9 }
 0x12f   :  { %1089 = vmatmul.mubr.msk.f32.gmra.mrb[10].mxu1 %vm70_vm0, %v191_v11 }
 0x130   :  { %1152 = vmatprep.mubr.msk.f32.mxu1 %vm570_vm5, %v539_v12  ;;  %v540_v12 = vld [vmem:[%s1672_s5 + $0x8] sm:$0xff] }
 0x1ee   :  { %v322_v20 = vpop.f32.mrb[0].mxu1  ;;  %v411_v21 = vpop.f32.mrb[4].mxu0 }
 0x1ef   :  { %v324_v24 = vpop.f32.mrb[1].mxu1  ;;  %v413_v25 = vpop.f32.mrb[5].mxu0  ;;  %v323_v30 = vadd.f32 %v322_v20, %v222_v22  ;;  %v412_v31 = vadd.f32 %v411_v21, %v230_v23  ;;  %v548_v20 = vld [vmem:[%s1672_s5 + $0x48] sm:$0xff]  ;;  %v549_v21 = vld [vmem:[%s1672_s5 + $0x50] sm:$0xff] }
 0x1f0   :  { %v325_v36 = vadd.f32 %v324_v24, %v226_v26  ;;  %v414_v37 = vadd.f32 %v413_v25, %v234_v27  ;;  %v552_v24 = vld [vmem:[%s1672_s5 + $0x68] sm:$0xf]  ;;  %v1553_v25 = vld [vmem:[%s1673_s6] ss:$0 sm:$0xff] }
 0x1f2   :  { %v328_v28 = vpop.f32.mrb[2].mxu1  ;;  %v417_v29 = vpop.f32.mrb[6].mxu0 }
 0x1f3   :  { %v329_v32 = vadd.f32 %v328_v28, %v222_v22  ;;  %v418_v33 = vadd.f32 %v417_v29, %v230_v23  ;;  %v330_v34 = vpop.f32.mrb[3].mxu1  ;;  %v419_v35 = vpop.f32.mrb[7].mxu0 }
 0x1f4   :  { %v331_v38 = vadd.f32 %v330_v34, %v226_v26  ;;  %v420_v39 = vadd.f32 %v419_v35, %v234_v27 }
 0x1f5   :  { %v1205_v40 = vpack.c.bf16 %v329_v32, %v323_v30  ;;  %v1213_v41 = vpack.c.bf16 %v418_v33, %v412_v31 }
 0x1f6   :  { %v1209_v42 = vpack.c.bf16 %v331_v38, %v325_v36  ;;  %v1217_v43 = vpack.c.bf16 %v420_v39, %v414_v37  ;;  %v334_v44 = vpop.f32.mrb[4].mxu1  ;;  %v423_v45 = vpop.f32.mrb[8].mxu0 }
 0x1f7   :  { %v336_v47 = vpop.f32.mrb[5].mxu1  ;;  %v425_v48 = vpop.f32.mrb[9].mxu0  ;;  %1206 = vmatprep.subr.bf16.mxu0 %v1205_v40  ;;  %v335_v52 = vadd.f32 %v334_v44, %v222_v22  ;;  %v424_v53 = vadd.f32 %v423_v45, %v230_v23 }
 0x1f8   :  { %1208 = vmatpush3.bf16.msra.mxu0 %v1205_v40  ;;  %v337_v58 = vadd.f32 %v336_v47, %v226_v26  ;;  %v426_v59 = vadd.f32 %v425_v48, %v234_v27 }
 0x1f9   :  { %1210 = vmatprep.subr.bf16.mxu0 %v1209_v42 }
 0x1fa   :  { %v340_v49 = vpop.f32.mrb[6].mxu1  ;;  %v429_v50 = vpop.f32.mrb[10].mxu0 }
 0x1fb   :  { %v341_v54 = vadd.f32 %v340_v49, %v222_v22  ;;  %v430_v55 = vadd.f32 %v429_v50, %v230_v23  ;;  %v342_v56 = vpop.f32.mrb[7].mxu1  ;;  %v431_v57 = vpop.f32.mrb[11].mxu0  ;;  %v550_v22 = vld [vmem:[%s1672_s5 + $0x58] sm:$0xff]  ;;  %v551_v23 = vld [vmem:[%s1672_s5 + $0x60] sm:$0xff] }
 0x1fc   :  { %v343_v60 = vadd.f32 %v342_v56, %v226_v26  ;;  %v432_v61 = vadd.f32 %v431_v57, %v234_v27  ;;  %1212 = vmatpush3.bf16.msra.mxu0 %v1209_v42 }
 0x1fd   :  { %v1225_v62 = vpack.c.bf16 %v341_v54, %v335_v52  ;;  %v1233_v63 = vpack.c.bf16 %v430_v55, %v424_v53  ;;  %1214 = vmatprep.subr.bf16.mxu0 %v1213_v41 }
 0x1fe   :  { %v1229_v0 = vpack.c.bf16 %v343_v60, %v337_v58  ;;  %v1237_v1 = vpack.c.bf16 %v432_v61, %v426_v59  ;;  %v1087_v2 = vpop.f32.mrb[8].mxu1 }
 0x1ff   :  { %v506_v3 = vadd.f32 %v1087_v2, %v238_v51  ;;  %v500_v4 = vpop.f32.mrb[9].mxu1  ;;  %1226 = vmatprep.subr.bf16.mxu1 %v1225_v62 }
 0x200   :  { %v501_v5 = vadd.f32 %v500_v4, %v238_v51  ;;  %1216 = vmatpush3.bf16.msra.mxu0 %v1213_v41  ;;  %1228 = vmatpush3.bf16.msra.mxu1 %v1225_v62 }
 0x201   :  { %1218 = vmatprep.subr.bf16.mxu0 %v1217_v43  ;;  %1230 = vmatprep.subr.bf16.mxu1 %v1229_v0 }
 0x202   :  { %v1221_v6 = vpack.c.bf16 %v506_v3, %v501_v5  ;;  %v1090_v7 = vpop.f32.mrb[10].mxu1 }
 0x203   :  { %v516_v8 = vadd.f32 %v1090_v7, %v238_v51  ;;  %v510_v9 = vpop.f32.mrb[11].mxu1 }
 0x204   :  { %v511_v10 = vadd.f32 %v510_v9, %v238_v51  ;;  %1220 = vmatpush3.bf16.msra.mxu0 %v1217_v43  ;;  %1232 = vmatpush3.bf16.msra.mxu1 %v1229_v0 }
 0x205   :  { %1222 = vmatprep.subr.bf16.mxu0 %v1221_v6  ;;  %1234 = vmatprep.subr.bf16.mxu1 %v1233_v63 }
 0x206   :  { %v1241_v11 = vpack.c.bf16 %v516_v8, %v511_v10 }
 0x208   :  { %1224 = vmatpush3.bf16.msra.mxu0 %v1221_v6  ;;  %1236 = vmatpush3.bf16.msra.mxu1 %v1233_v63 }
 0x209   :  { %1238 = vmatprep.subr.bf16.mxu1 %v1237_v1 }
 0x20b   :  { %1112 = vmatmul.mubr.msk.f32.vlgmr.msra.gmra.mrb[12].mxu0 %vm570_vm5, %v540_v12 }
 0x20c   :  { %1240 = vmatpush3.bf16.msra.mxu1 %v1237_v1  ;;  %1114 = vmatprep.mubr.msk.f32.mxu0 %vm570_vm5, %v541_v13 }
 0x20d   :  { %1242 = vmatprep.subr.bf16.mxu1 %v1241_v11 }
 0x20f   :  { %1115 = vmatmul.mubr.msk.f32.gmra.mrb[14].mxu0 %vm570_vm5, %v542_v14 }
 0x210   :  { %1244 = vmatpush3.bf16.msra.mxu1 %v1241_v11  ;;  %1117 = vmatprep.mubr.msk.f32.mxu0 %vm570_vm5, %v543_v15 }
 0x213   :  { %1153 = vmatmul.mubr.msk.f32.vlgmr.msra.gmra.mrb[12].mxu1 %vm570_vm5, %v540_v12  ;;  %1118 = vmatmul.mubr.msk.f32.gmra.mrb[16].mxu0 %vm570_vm5, %v544_v16 }
 0x214   :  { %1155 = vmatprep.mubr.msk.f32.mxu1 %vm570_vm5, %v541_v13  ;;  %1120 = vmatprep.mubr.msk.f32.mxu0 %vm570_vm5, %v545_v17 }
 0x217   :  { %1156 = vmatmul.mubr.msk.f32.gmra.mrb[14].mxu1 %vm570_vm5, %v542_v14  ;;  %1121 = vmatmul.mubr.msk.f32.gmra.mrb[18].mxu0 %vm570_vm5, %v546_v18 }
 0x218   :  { %1158 = vmatprep.mubr.msk.f32.mxu1 %vm570_vm5, %v543_v15  ;;  %1123 = vmatprep.mubr.msk.f32.mxu0 %vm570_vm5, %v547_v19 }
 0x21b   :  { %1159 = vmatmul.mubr.msk.f32.gmra.mrb[16].mxu1 %vm570_vm5, %v544_v16  ;;  %1124 = vmatmul.mubr.msk.f32.gmra.mrb[20].mxu0 %vm570_vm5, %v548_v20 }
 0x21c   :  { %1161 = vmatprep.mubr.msk.f32.mxu1 %vm570_vm5, %v545_v17  ;;  %1126 = vmatprep.mubr.msk.f32.mxu0 %vm570_vm5, %v549_v21 }
 0x21f   :  { %1162 = vmatmul.mubr.msk.f32.gmra.mrb[18].mxu1 %vm570_vm5, %v546_v18  ;;  %1127 = vmatmul.mubr.msk.f32.gmra.mrb[22].mxu0 %vm570_vm5, %v550_v22 }
 0x220   :  { %1164 = vmatprep.mubr.msk.f32.mxu1 %vm570_vm5, %v547_v19  ;;  %1129 = vmatprep.mubr.msk.f32.mxu0 %vm570_vm5, %v551_v23 }
 0x223   :  { %1165 = vmatmul.mubr.msk.f32.gmra.mrb[20].mxu1 %vm570_vm5, %v548_v20  ;;  %1130 = vmatmul.mubr.msk.f32.gmra.mrb[24].mxu0 %vm570_vm5, %v552_v24 }
 0x224   :  { %1167 = vmatprep.mubr.msk.f32.mxu1 %vm570_vm5, %v549_v21 }
 0x227   :  { %1168 = vmatmul.mubr.msk.f32.gmra.mrb[22].mxu1 %vm570_vm5, %v550_v22 }
 0x228   :  { %1170 = vmatprep.mubr.msk.f32.mxu1 %vm570_vm5, %v551_v23 }
 0x22b   :  { %1171 = vmatmul.mubr.msk.f32.gmra.mrb[24].mxu1 %vm570_vm5, %v552_v24 }
 0x2de   :  { %v1113_v26 = vpop.f32.mrb[12].mxu0 }
 0x2df   :  { %v685_v27 = vadd.f32 %v1113_v26, %v1553_v25  ;;  %v679_v28 = vpop.f32.mrb[13].mxu0 }
 0x2e0   :  { %v680_v29 = vadd.f32 %v1553_v25, %v679_v28 }
 0x2e1   :  { %749 = vst [vmem:[%s1674_s7 + $0x8] sm:$0xff] %v685_v27 }
 0x2e2   :  { %748 = vst [vmem:[%s1674_s7] sm:$0xff] %v680_v29  ;;  %v1116_v30 = vpop.f32.mrb[14].mxu0 }
 0x2e3   :  { %v695_v31 = vadd.f32 %v1116_v30, %v1553_v25  ;;  %v689_v32 = vpop.f32.mrb[15].mxu0 }
 0x2e4   :  { %v690_v33 = vadd.f32 %v1553_v25, %v689_v32 }
 0x2e5   :  { %751 = vst [vmem:[%s1674_s7 + $0x18] sm:$0xff] %v695_v31 }
 0x2e6   :  { %v1154_v34 = vpop.f32.mrb[12].mxu1  ;;  %750 = vst [vmem:[%s1674_s7 + $0x10] sm:$0xff] %v690_v33  ;;  %v1119_v35 = vpop.f32.mrb[16].mxu0 }
 0x2e7   :  { %v845_v36 = vadd.f32 %v1154_v34, %v1553_v25  ;;  %v839_v37 = vpop.f32.mrb[13].mxu1  ;;  %v705_v38 = vadd.f32 %v1119_v35, %v1553_v25  ;;  %v699_v39 = vpop.f32.mrb[17].mxu0 }
 0x2e8   :  { %v840_v40 = vadd.f32 %v1553_v25, %v839_v37  ;;  %v700_v41 = vadd.f32 %v1553_v25, %v699_v39 }
 0x2e9   :  { %980 = vst [vmem:[%s1674_s7 + $0x78] sm:$0xff] %v845_v36  ;;  %753 = vst [vmem:[%s1674_s7 + $0x28] sm:$0xff] %v705_v38 }
 0x2ea   :  { %979 = vst [vmem:[%s1674_s7 + $0x70] sm:$0xff] %v840_v40  ;;  %v1157_v42 = vpop.f32.mrb[14].mxu1  ;;  %752 = vst [vmem:[%s1674_s7 + $0x20] sm:$0xff] %v700_v41  ;;  %v1122_v43 = vpop.f32.mrb[18].mxu0 }
 0x2eb   :  { %v855_v44 = vadd.f32 %v1157_v42, %v1553_v25  ;;  %v849_v45 = vpop.f32.mrb[15].mxu1  ;;  %v715_v46 = vadd.f32 %v1122_v43, %v1553_v25  ;;  %v709_v47 = vpop.f32.mrb[19].mxu0 }
 0x2ec   :  { %v850_v48 = vadd.f32 %v1553_v25, %v849_v45  ;;  %v710_v49 = vadd.f32 %v1553_v25, %v709_v47 }
 0x2ed   :  { %982 = vst [vmem:[%s1674_s7 + $0x88] sm:$0xff] %v855_v44  ;;  %755 = vst [vmem:[%s1674_s7 + $0x38] sm:$0xff] %v715_v46 }
 0x2ee   :  { %981 = vst [vmem:[%s1674_s7 + $0x80] sm:$0xff] %v850_v48  ;;  %v1160_v50 = vpop.f32.mrb[16].mxu1  ;;  %754 = vst [vmem:[%s1674_s7 + $0x30] sm:$0xff] %v710_v49  ;;  %v1125_v51 = vpop.f32.mrb[20].mxu0 }
 0x2ef   :  { %v865_v52 = vadd.f32 %v1160_v50, %v1553_v25  ;;  %v859_v53 = vpop.f32.mrb[17].mxu1  ;;  %v725_v54 = vadd.f32 %v1125_v51, %v1553_v25  ;;  %v719_v55 = vpop.f32.mrb[21].mxu0 }
 0x2f0   :  { %v860_v56 = vadd.f32 %v1553_v25, %v859_v53  ;;  %v720_v57 = vadd.f32 %v1553_v25, %v719_v55 }
 0x2f1   :  { %984 = vst [vmem:[%s1674_s7 + $0x98] sm:$0xff] %v865_v52  ;;  %757 = vst [vmem:[%s1674_s7 + $0x48] sm:$0xff] %v725_v54 }
 0x2f2   :  { %983 = vst [vmem:[%s1674_s7 + $0x90] sm:$0xff] %v860_v56  ;;  %v1163_v58 = vpop.f32.mrb[18].mxu1  ;;  %756 = vst [vmem:[%s1674_s7 + $0x40] sm:$0xff] %v720_v57  ;;  %v1128_v59 = vpop.f32.mrb[22].mxu0 }
 0x2f3   :  { %v875_v60 = vadd.f32 %v1163_v58, %v1553_v25  ;;  %v869_v61 = vpop.f32.mrb[19].mxu1  ;;  %v735_v62 = vadd.f32 %v1128_v59, %v1553_v25  ;;  %v729_v63 = vpop.f32.mrb[23].mxu0 }
 0x2f4   :  { %v870_v0 = vadd.f32 %v1553_v25, %v869_v61  ;;  %v730_v1 = vadd.f32 %v1553_v25, %v729_v63 }
 0x2f5   :  { %986 = vst [vmem:[%s1674_s7 + $0xa8] sm:$0xff] %v875_v60  ;;  %759 = vst [vmem:[%s1674_s7 + $0x58] sm:$0xff] %v735_v62 }
 0x2f6   :  { %985 = vst [vmem:[%s1674_s7 + $0xa0] sm:$0xff] %v870_v0  ;;  %v1166_v2 = vpop.f32.mrb[20].mxu1  ;;  %758 = vst [vmem:[%s1674_s7 + $0x50] sm:$0xff] %v730_v1  ;;  %v1131_v3 = vpop.f32.mrb[24].mxu0 }
 0x2f7   :  { %v885_v4 = vadd.f32 %v1166_v2, %v1553_v25  ;;  %v879_v5 = vpop.f32.mrb[21].mxu1  ;;  %v745_v6 = vadd.f32 %v1131_v3, %v1553_v25  ;;  %v739_v7 = vpop.f32.mrb[25].mxu0 }
 0x2f8   :  { %v880_v8 = vadd.f32 %v1553_v25, %v879_v5  ;;  %v740_v9 = vadd.f32 %v1553_v25, %v739_v7 }
 0x2f9   :  { %988 = vst [vmem:[%s1674_s7 + $0xb8] sm:$0xff] %v885_v4  ;;  %761 = vst [vmem:[%s1674_s7 + $0x68] sm:$0xf] %v745_v6 }
 0x2fa   :  { %987 = vst [vmem:[%s1674_s7 + $0xb0] sm:$0xff] %v880_v8  ;;  %v1169_v10 = vpop.f32.mrb[22].mxu1  ;;  %760 = vst [vmem:[%s1674_s7 + $0x60] sm:$0xff] %v740_v9 }
 0x2fb   :  { %v895_v11 = vadd.f32 %v1169_v10, %v1553_v25  ;;  %v889_v12 = vpop.f32.mrb[23].mxu1 }
 0x2fc   :  { %v890_v13 = vadd.f32 %v1553_v25, %v889_v12 }
 0x2fd   :  { %990 = vst [vmem:[%s1674_s7 + $0xc8] sm:$0xff] %v895_v11 }
 0x2fe   :  { %989 = vst [vmem:[%s1674_s7 + $0xc0] sm:$0xff] %v890_v13  ;;  %v1172_v14 = vpop.f32.mrb[24].mxu1 }
 0x2ff   :  { %v905_v15 = vadd.f32 %v1172_v14, %v1553_v25  ;;  %v899_v16 = vpop.f32.mrb[25].mxu1 }
 0x300   :  { %v900_v17 = vadd.f32 %v1553_v25, %v899_v16 }
 0x301   :  { %992 = vst [vmem:[%s1674_s7 + $0xd8] sm:$0xf] %v905_v15 }
 0x302   :  { %991 = vst [vmem:[%s1674_s7 + $0xd0] sm:$0xff] %v900_v17 }
 0x303   :  { %927 = vsyncpa [#allocation4], 1 }
 0x304   :  { %928 = vsyncpa [#allocation6], 1 }

</bundles_post_ra>
